<compile_context>
chip_gen: v7x
topology: tpu7x:2x2x1
jax: 0.10.0
libtpu: 0.0.40
codegen_flags: <defaults>
</compile_context>

<pallas_src>
import jax
import jax.numpy as jnp
from jax.experimental import pallas as pl
from jax.experimental.pallas import tpu as pltpu


# ---------------------------------------------------------------------------
# Pallas kernel: fused fusion head
# ---------------------------------------------------------------------------

def _full_spec(shape):
    n = len(shape)
    return pl.BlockSpec(shape, lambda i, _n=n: (0,) * _n)


def _fusion_kernel(text_ref, vpatch_ref, wf1t_ref, wvid_ref, bf1_ref,
                   wf2_ref, bf2_ref, o_ref):
    # text branch: torch.mean(last_hidden_state, dim=1)  (sublane reduce -> XLU)
    text = jnp.mean(text_ref[...], axis=1)                          # (B, 768)

    # fc1 over concat([text, video], dim=1) as a split matmul.
    #   text part : text @ wf1[:768]
    #   video part: (pre-reduced patch means) @ folded
    #               (w_conv_flat @ w_sur @ w_cls @ wf1[768:]) weight,
    #               with b_cls @ wf1[768:] already folded into bf1.
    h = (jnp.dot(text, wf1t_ref[...], preferred_element_type=jnp.float32)
         + jnp.dot(vpatch_ref[...], wvid_ref[...],
                   preferred_element_type=jnp.float32)
         + bf1_ref[...])                                            # (B, 128)
    h = jnp.maximum(h, 0.0)                                         # ReLU
    o_ref[...] = jnp.dot(h, wf2_ref[...],
                         preferred_element_type=jnp.float32) + bf2_ref[...]


# ---------------------------------------------------------------------------
# Param prep (done once): algebraic fold of the linear video branch
# ---------------------------------------------------------------------------

def prepare_params(params, cin):
    K = 9 * cin                                   # im2col K of the 3x3 conv
    K_pad = ((K + 127) // 128) * 128              # lane-pad K to 128

    w_flat = params["w_conv"].reshape(K, 32)      # (kh,kw,cin) flatten, HWIO
    wf1 = params["w_fc1"]                         # (768 + 512, 128)
    wf1t, wf1v = wf1[:768], wf1[768:]             # torch.cat order: text first

    # conv -> pool -> surrogate -> classifier -> fc1(video half), all linear:
    w_vid = w_flat @ params["w_sur"] @ params["w_cls"] @ wf1v        # (K, 128)
    w_vid_pad = jnp.zeros((K_pad, wf1.shape[1]), jnp.float32).at[:K].set(w_vid)
    b_fc1_eff = (params["b_fc1"] + params["b_cls"] @ wf1v).reshape(1, -1)

    return {
        "wf1t": wf1t,                             # (768, 128)
        "w_vid": w_vid_pad,                       # (K_pad, 128)
        "b_fc1": b_fc1_eff,                       # (1, 128)
        "w_fc2": params["w_fc2"],                 # (128, num_classes)
        "b_fc2": params["b_fc2"].reshape(1, -1),  # (1, num_classes)
        "k": K,
        "k_pad": K_pad,
    }


# ---------------------------------------------------------------------------
# Wrapper
# ---------------------------------------------------------------------------

def multimodal_early_fusion(x_3d, text_hidden, prep):
    B = x_3d.shape[0]
    Cin = x_3d.shape[1] * x_3d.shape[2]          # num_input_channels * 3
    H, W = x_3d.shape[3], x_3d.shape[4]
    Ho, Wo = H // 2, W // 2                      # conv stride 2, pad 1, k=3
    K, K_pad = prep["k"], prep["k_pad"]
    num_classes = prep["w_fc2"].shape[1]

    # --- glue: x_3d.view(B, C1*C2, H, W); per-tap strided spatial means ------
    # (no im2col materialization — input is read exactly once)
    x = x_3d.reshape(B, Cin, H, W)
    xp = jnp.pad(x, ((0, 0), (0, 0), (1, 1), (1, 1)))
    taps = [jnp.mean(xp[:, :, kh:kh + 2 * Ho:2, kw:kw + 2 * Wo:2], axis=(2, 3))
            for kh in range(3) for kw in range(3)]               # 9 x (B, Cin)
    patch_mean = jnp.stack(taps, axis=1).reshape(B, K)           # (B, 9*Cin)
    patch_mean = jnp.pad(patch_mean, ((0, 0), (0, K_pad - K)))   # (B, K_pad)

    # --- single fused Pallas kernel ------------------------------------------
    out = pl.pallas_call(
        _fusion_kernel,
        out_shape=jax.ShapeDtypeStruct((B, num_classes), jnp.float32),
        grid=(1,),
        in_specs=[
            _full_spec(text_hidden.shape),
            _full_spec(patch_mean.shape),
            _full_spec(prep["wf1t"].shape),
            _full_spec(prep["w_vid"].shape),
            _full_spec(prep["b_fc1"].shape),
            _full_spec(prep["w_fc2"].shape),
            _full_spec(prep["b_fc2"].shape),
        ],
        out_specs=_full_spec((B, num_classes)),
        compiler_params=pltpu.CompilerParams(
            dimension_semantics=("arbitrary",)),
    )(text_hidden, patch_mean, prep["wf1t"], prep["w_vid"],
      prep["b_fc1"], prep["w_fc2"], prep["b_fc2"])
    return out


# ---------------------------------------------------------------------------
# Deterministic parameters + pure-JAX (unfolded) reference
# ---------------------------------------------------------------------------

def init_params(key, cin, num_classes=4):
    ks = jax.random.split(key, 7)
    return {
        "w_conv": jax.random.normal(ks[0], (3, 3, cin, 32), jnp.float32) * 0.05,
        "w_sur":  jax.random.normal(ks[1], (32, 1280), jnp.float32) * 0.05,
        "w_cls":  jax.random.normal(ks[2], (1280, 512), jnp.float32) * 0.02,
        "b_cls":  jax.random.normal(ks[3], (512,), jnp.float32) * 0.01,
        "w_fc1":  jax.random.normal(ks[4], (512 + 768, 128), jnp.float32) * 0.02,
        "b_fc1":  jnp.zeros((128,), jnp.float32),
        "w_fc2":  jax.random.normal(ks[5], (128, num_classes), jnp.float32) * 0.02,
        "b_fc2":  jax.random.normal(ks[6], (num_classes,), jnp.float32) * 0.01,
    }


def reference(x_3d, text_hidden, params):
    B = x_3d.shape[0]
    Cin = x_3d.shape[1] * x_3d.shape[2]
    x = x_3d.reshape(B, Cin, x_3d.shape[3], x_3d.shape[4])
    conv = jax.lax.conv_general_dilated(
        x, params["w_conv"], window_strides=(2, 2), padding=((1, 1), (1, 1)),
        dimension_numbers=("NCHW", "HWIO", "NCHW"))                # (B,32,Ho,Wo)
    v_pool = jnp.mean(conv, axis=(2, 3))                            # (B,32)
    video = v_pool @ params["w_sur"] @ params["w_cls"] + params["b_cls"]
    text = jnp.mean(text_hidden, axis=1)                            # (B,768)
    comb = jnp.concatenate([text, video], axis=1)                   # (B,1280)
    h = jnp.maximum(comb @ params["w_fc1"] + params["b_fc1"], 0.0)
    return h @ params["w_fc2"] + params["b_fc2"]


# ---------------------------------------------------------------------------

if __name__ == "__main__":
    key = jax.random.PRNGKey(0)
    k_x, k_t, k_p = jax.random.split(key, 3)

    B, NUM_INPUT_CHANNELS, H, W, L, NUM_CLASSES = 2, 4, 16, 16, 8, 4
    # x_3d: (B, num_input_channels, 3, H, W) -> view -> (B, num_input_channels*3, H, W)
    x_3d = jax.random.normal(k_x, (B, NUM_INPUT_CHANNELS, 3, H, W), jnp.float32)
    # stand-in for BERT last_hidden_state of the tokenized `title`
    text_hidden = jax.random.normal(k_t, (B, L, 768), jnp.float32)

    params = init_params(k_p, cin=NUM_INPUT_CHANNELS * 3, num_classes=NUM_CLASSES)
    prep = prepare_params(params, cin=NUM_INPUT_CHANNELS * 3)

    out = jax.block_until_ready(multimodal_early_fusion(x_3d, text_hidden, prep))
    ref = reference(x_3d, text_hidden, params)

    assert out.shape == (B, NUM_CLASSES), out.shape
    assert jnp.all(jnp.isfinite(out))
    assert jnp.allclose(out, ref, rtol=1e-3, atol=1e-3), (out, ref)
    print("KERNEL_OK")
</pallas_src>

<mosaic_0001>
module attributes {stable_mosaic.version = 11 : i64} {
  func.func @_fusion_kernel(%arg0: i32, %arg1: memref<2x8x768xf32, #tpu.memory_space<vmem>>, %arg2: memref<2x128xf32, #tpu.memory_space<vmem>>, %arg3: memref<768x128xf32, #tpu.memory_space<vmem>>, %arg4: memref<128x128xf32, #tpu.memory_space<vmem>>, %arg5: memref<1x128xf32, #tpu.memory_space<vmem>>, %arg6: memref<128x4xf32, #tpu.memory_space<vmem>>, %arg7: memref<1x4xf32, #tpu.memory_space<vmem>>, %arg8: memref<2x4xf32, #tpu.memory_space<vmem>>) attributes {dimension_semantics = [#tpu.dimension_semantics<arbitrary>], iteration_bounds = array<i64: 1>, scalar_prefetch = 0 : i64, scratch_operands = 0 : i64, tpu.core_type = #tpu.core_type<tc>, window_params = [{pipeline_mode = #tpu.pipeline_mode<synchronous>, transform_indices = @transform_0, window_bounds = array<i64: 2, 8, 768>}, {pipeline_mode = #tpu.pipeline_mode<synchronous>, transform_indices = @transform_1, window_bounds = array<i64: 2, 128>}, {pipeline_mode = #tpu.pipeline_mode<synchronous>, transform_indices = @transform_2, window_bounds = array<i64: 768, 128>}, {pipeline_mode = #tpu.pipeline_mode<synchronous>, transform_indices = @transform_3, window_bounds = array<i64: 128, 128>}, {pipeline_mode = #tpu.pipeline_mode<synchronous>, transform_indices = @transform_4, window_bounds = array<i64: 1, 128>}, {pipeline_mode = #tpu.pipeline_mode<synchronous>, transform_indices = @transform_5, window_bounds = array<i64: 128, 4>}, {pipeline_mode = #tpu.pipeline_mode<synchronous>, transform_indices = @transform_6, window_bounds = array<i64: 1, 4>}, {pipeline_mode = #tpu.pipeline_mode<synchronous>, transform_indices = @transform_7, window_bounds = array<i64: 2, 4>}]} {
    %c0 = arith.constant 0 : index
    %c0_0 = arith.constant 0 : index
    %c0_1 = arith.constant 0 : index
    %0 = vector.load %arg1[%c0, %c0_0, %c0_1] : memref<2x8x768xf32, #tpu.memory_space<vmem>>, vector<2x8x768xf32>
    %cst = arith.constant dense<0.000000e+00> : vector<2x768xf32>
    %1 = vector.multi_reduction <add>, %0, %cst [1] : vector<2x8x768xf32> to vector<2x768xf32>
    %cst_2 = arith.constant 8.000000e+00 : f32
    %2 = vector.broadcast %cst_2 : f32 to vector<2x768xf32>
    %3 = arith.divf %1, %2 : vector<2x768xf32>
    %c0_3 = arith.constant 0 : index
    %c0_4 = arith.constant 0 : index
    %4 = vector.load %arg3[%c0_3, %c0_4] : memref<768x128xf32, #tpu.memory_space<vmem>>, vector<768x128xf32>
    %cst_5 = arith.constant dense<0.000000e+00> : vector<2x128xf32>
    %5 = tpu.matmul %3, %4, %cst_5 {dimension_numbers = #tpu.dot_dimension_numbers<[1], [0], [0], [1], [0, 0, 1, 1], [], []>} : vector<2x768xf32>, vector<768x128xf32>, vector<2x128xf32> -> vector<2x128xf32>
    %c0_6 = arith.constant 0 : index
    %c0_7 = arith.constant 0 : index
    %6 = vector.load %arg2[%c0_6, %c0_7] : memref<2x128xf32, #tpu.memory_space<vmem>>, vector<2x128xf32>
    %c0_8 = arith.constant 0 : index
    %c0_9 = arith.constant 0 : index
    %7 = vector.load %arg4[%c0_8, %c0_9] : memref<128x128xf32, #tpu.memory_space<vmem>>, vector<128x128xf32>
    %cst_10 = arith.constant dense<0.000000e+00> : vector<2x128xf32>
    %8 = tpu.matmul %6, %7, %cst_10 {dimension_numbers = #tpu.dot_dimension_numbers<[1], [0], [0], [1], [0, 0, 1, 1], [], []>} : vector<2x128xf32>, vector<128x128xf32>, vector<2x128xf32> -> vector<2x128xf32>
    %9 = arith.addf %5, %8 : vector<2x128xf32>
    %c0_11 = arith.constant 0 : index
    %c0_12 = arith.constant 0 : index
    %10 = vector.load %arg5[%c0_11, %c0_12] : memref<1x128xf32, #tpu.memory_space<vmem>>, vector<1x128xf32>
    %11 = vector.broadcast %10 : vector<1x128xf32> to vector<2x128xf32>
    %12 = arith.addf %9, %11 : vector<2x128xf32>
    %cst_13 = arith.constant 0.000000e+00 : f32
    %13 = vector.broadcast %cst_13 : f32 to vector<2x128xf32>
    %14 = arith.maximumf %12, %13 : vector<2x128xf32>
    %c0_14 = arith.constant 0 : index
    %c0_15 = arith.constant 0 : index
    %15 = vector.load %arg6[%c0_14, %c0_15] : memref<128x4xf32, #tpu.memory_space<vmem>>, vector<128x4xf32>
    %cst_16 = arith.constant dense<0.000000e+00> : vector<2x4xf32>
    %16 = tpu.matmul %14, %15, %cst_16 {dimension_numbers = #tpu.dot_dimension_numbers<[1], [0], [0], [1], [0, 0, 1, 1], [], []>} : vector<2x128xf32>, vector<128x4xf32>, vector<2x4xf32> -> vector<2x4xf32>
    %c0_17 = arith.constant 0 : index
    %c0_18 = arith.constant 0 : index
    %17 = vector.load %arg7[%c0_17, %c0_18] : memref<1x4xf32, #tpu.memory_space<vmem>>, vector<1x4xf32>
    %18 = vector.broadcast %17 : vector<1x4xf32> to vector<2x4xf32>
    %19 = arith.addf %16, %18 : vector<2x4xf32>
    %c0_19 = arith.constant 0 : index
    %c0_20 = arith.constant 0 : index
    %20 = vector.load %arg8[%c0_19, %c0_20] : memref<2x4xf32, #tpu.memory_space<vmem>>, vector<2x4xf32>
    tpu.vector_store %arg8[%c0_19, %c0_20], %19 {strides = array<i32>} : memref<2x4xf32, #tpu.memory_space<vmem>>, vector<2x4xf32>,
    return
  }
  func.func @transform_0(%arg0: i32) -> (i32, i32, i32) {
    %c0_i32 = arith.constant 0 : i32
    %c0_i32_0 = arith.constant 0 : i32
    %c0_i32_1 = arith.constant 0 : i32
    %c0_i32_2 = arith.constant 0 : i32
    return %c0_i32, %c0_i32_0, %c0_i32_1 : i32, i32, i32
  }
  func.func @transform_1(%arg0: i32) -> (i32, i32) {
    %c0_i32 = arith.constant 0 : i32
    %c0_i32_0 = arith.constant 0 : i32
    %c0_i32_1 = arith.constant 0 : i32
    return %c0_i32, %c0_i32_0 : i32, i32
  }
  func.func @transform_2(%arg0: i32) -> (i32, i32) {
    %c0_i32 = arith.constant 0 : i32
    %c0_i32_0 = arith.constant 0 : i32
    %c0_i32_1 = arith.constant 0 : i32
    return %c0_i32, %c0_i32_0 : i32, i32
  }
  func.func @transform_3(%arg0: i32) -> (i32, i32) {
    %c0_i32 = arith.constant 0 : i32
    %c0_i32_0 = arith.constant 0 : i32
    %c0_i32_1 = arith.constant 0 : i32
    return %c0_i32, %c0_i32_0 : i32, i32
  }
  func.func @transform_4(%arg0: i32) -> (i32, i32) {
    %c0_i32 = arith.constant 0 : i32
    %c0_i32_0 = arith.constant 0 : i32
    %c0_i32_1 = arith.constant 0 : i32
    return %c0_i32, %c0_i32_0 : i32, i32
  }
  func.func @transform_5(%arg0: i32) -> (i32, i32) {
    %c0_i32 = arith.constant 0 : i32
    %c0_i32_0 = arith.constant 0 : i32
    %c0_i32_1 = arith.constant 0 : i32
    return %c0_i32, %c0_i32_0 : i32, i32
  }
  func.func @transform_6(%arg0: i32) -> (i32, i32) {
    %c0_i32 = arith.constant 0 : i32
    %c0_i32_0 = arith.constant 0 : i32
    %c0_i32_1 = arith.constant 0 : i32
    return %c0_i32, %c0_i32_0 : i32, i32
  }
  func.func @transform_7(%arg0: i32) -> (i32, i32) {
    %c0_i32 = arith.constant 0 : i32
    %c0_i32_0 = arith.constant 0 : i32
    %c0_i32_1 = arith.constant 0 : i32
    return %c0_i32, %c0_i32_0 : i32, i32
  }
}

</mosaic_0001>

<bundles_post_ra>
// kernel: tpu_custom_call.1
= control target key start
LH: loop header
LB: loop body
LE: loop exit
PB: predicated region body
PF: predicated region fallthrough
CT: control target
= control target key end

     0   :  { %12 = vsyncpa [#allocation3], 0  ;;  %s1395_s0 = inlined_call_operand.hbm [shape: f32[2,8,768], index: 0, kind: input, shape index: {}]   ;;  %s1396_s1 = inlined_call_operand.vmem [shape: f32[2,128], index: 1, kind: input, shape index: {}]   ;;  %s1397_s2 = inlined_call_operand.hbm [shape: f32[768,128], index: 2, kind: input, shape index: {}]   ;;  %s1398_s3 = inlined_call_operand.vmem [shape: f32[128,128], index: 3, kind: input, shape index: {}]   ;;  %s1399_s4 = inlined_call_operand.vmem [shape: f32[1,128], index: 4, kind: input, shape index: {}]   ;;  %s1400_s5 = inlined_call_operand.vmem [shape: f32[128,4], index: 5, kind: input, shape index: {}]   ;;  %s1401_s6 = inlined_call_operand.vmem [shape: f32[1,4], index: 6, kind: input, shape index: {}]   ;;  %s1402_s7 = inlined_call_operand.hbm [shape: f32[2,4], index: 7, kind: output, shape index: {}]  }
   0x1   :  { %13 = vsyncpa [#allocation6], 0 }
   0x2   :  { %14 = vsyncpa [#allocation4], 0  ;;  %s1127_s24 = smov [#allocation2]   ;;  %s1055_s28 = scalar_lea.hbm %s1395_s0, 1536 }
   0x3   :  { %s20_s25 = sshll.u32 %s1127_s24, 4  ;;  %p1056_p0 = scmp.ne.s32.totalorder %s1395_s0, %s1055_s28  ;;  %s21_s25 = int_to_ptr.vmem [resolvable:$true] %s20_s25 }
   0x4   :  { %p1059_p1 = scmp.lt.u32.totalorder %s1055_s28, %s1395_s0 }
   0x6   :  { %p1061_p2 = pnand %p1059_p1, %p1056_p0 }
   0x8   :  { %1064 = shalt.err (!%p1061_p2)
}
   0x9   :  { %s1065_s10 = scalar_lea.vmem %s21_s25, 1536  ;;  %p1070_p4 = scmp.lt.s32.totalorder %s21_s25, %s21_s25 }
   0xa   :  { %p1066_p3 = scmp.ne.s32.totalorder %s21_s25, %s1065_s10  ;;  %p1071_p5 = scmp.lt.s32.totalorder %s1065_s10, %s1065_s10 }
   0xc   :  { %p1072_p6 = por %p1071_p5, %p1070_p4 }
   0xe   :  { %p1073_p7 = pnand %p1072_p6, %p1066_p3 }
  0x10   :  { %1076 = shalt.err (!%p1073_p7)
}
  0x11   :  { %s1128_s11 = smov 768   ;;  %s1129_s12 = smov 48  }
  0x12   :  { %26 = dma.hbm_to_vmem [thread:$0]  %s1395_s0, 1536, %s21_s25, [#allocation3], %s1128_s11, %s1128_s11, %s1129_s12  }
  0x13   :  { %s1130_s15 = smov [#allocation5]   ;;  %s1077_s19 = scalar_lea.hbm %s1397_s2, 12288 }
  0x14   :  { %s34_s16 = sshll.u32 %s1130_s15, 4  ;;  %p1078_p8 = scmp.ne.s32.totalorder %s1397_s2, %s1077_s19  ;;  %s35_s16 = int_to_ptr.vmem [resolvable:$true] %s34_s16 }
  0x15   :  { %p1081_p9 = scmp.lt.u32.totalorder %s1077_s19, %s1397_s2 }
  0x17   :  { %p1083_p10 = pnand %p1081_p9, %p1078_p8 }
  0x19   :  { %1086 = shalt.err (!%p1083_p10)
}
  0x1a   :  { %s1087_s24 = scalar_lea.vmem %s35_s16, 12288  ;;  %p1092_p12 = scmp.lt.s32.totalorder %s35_s16, %s35_s16 }
  0x1b   :  { %p1088_p11 = scmp.ne.s32.totalorder %s35_s16, %s1087_s24  ;;  %p1093_p13 = scmp.lt.s32.totalorder %s1087_s24, %s1087_s24 }
  0x1d   :  { %p1094_p0 = por %p1093_p13, %p1092_p12 }
  0x1f   :  { %p1095_p1 = pnand %p1094_p0, %p1088_p11 }
  0x21   :  { %1098 = shalt.err (!%p1095_p1)
}
  0x22   :  { %s1131_s0 = smov 128   ;;  %s1132_s25 = smov 8  }
  0x23   :  { %40 = dma.hbm_to_vmem [thread:$0]  %s1397_s2, 12288, %s35_s16, [#allocation6], %s1131_s0, %s1131_s0, %s1132_s25  }
  0x24   :  { %1121 = dma.done.wait [#allocation3], 1536  }
  0x25   :  { %1122 = vsyncadd [#allocation3], 4294965760 }
  0x26   :  { %1123 = dma.done.wait [#allocation6], 12288  }
  0x27   :  { %1124 = vsyncadd [#allocation6], 4294955008  ;;  %v1133_v0 = vmov 0.0|0.0   ;;  %vm1134_vm0 = vmmov 0   ;;  %v1135_v1 = vmov 0.0   ;;  %v249_v2 = vld [vmem:[%s1398_s3] sm:$0xff] }
  0x28   :  { %901 = vmatprep.subr.bf16.mxu0 %v1133_v0  ;;  %863 = vmatprep.mubr.msk.f32.mxu0 %vm1134_vm0, %v1135_v1  ;;  %v250_v3 = vld [vmem:[%s1398_s3 + $0x8] sm:$0xff]  ;;  %v168_v4 = vld [vmem:[#allocation5 + $0x80] sm:$0xff]  ;;  %v251_v11 = vld [vmem:[%s1398_s3 + $0x10] sm:$0xff]  ;;  %vm347_vm1 = vcmask 1041409   ;;  %s1136_s19 = smov [#allocation7]   ;;  %vm672_vm2 = vcmask 25600  }
  0x29   :  { %v902_v5 = vpack.c.bf16 %v250_v3, %v249_v2  ;;  %v169_v6 = vld [vmem:[#allocation5 + $0x88] sm:$0xff]  ;;  %v152_v7 = vld [vmem:[#allocation5] sm:$0xff]  ;;  %v252_v12 = vld [vmem:[%s1398_s3 + $0x18] sm:$0xff]  ;;  %s680_s20 = sshll.u32 %s1136_s19, 4  ;;  %s681_s20 = int_to_ptr.vmem [resolvable:$true] %s680_s20 }
  0x2a   :  { %v153_v8 = vld [vmem:[#allocation5 + $0x8] sm:$0xff]  ;;  %v925_v9 = vpack.c.bf16 %v169_v6, %v168_v4  ;;  %v170_v13 = vld [vmem:[#allocation5 + $0x90] sm:$0xff]  ;;  %v905_v14 = vpack.c.bf16 %v252_v12, %v251_v11  ;;  %v171_v15 = vld [vmem:[#allocation5 + $0x98] sm:$0xff]  ;;  %s1099_s21 = scalar_lea.vmem %s681_s20, 32  ;;  %p1104_p3 = scmp.lt.s32.totalorder %s681_s20, %s681_s20 }
  0x2b   :  { %v927_v10 = vpack.c.bf16 %v153_v8, %v152_v7  ;;  %903 = vmatpush3.bf16.msra.mxu0 %v902_v5  ;;  %v154_v16 = vld [vmem:[#allocation5 + $0x10] sm:$0xff]  ;;  %v155_v17 = vld [vmem:[#allocation5 + $0x18] sm:$0xff]  ;;  %v929_v18 = vpack.c.bf16 %v171_v15, %v170_v13  ;;  %v253_v19 = vld [vmem:[%s1398_s3 + $0x20] sm:$0xff]  ;;  %p1100_p2 = scmp.ne.s32.totalorder %s681_s20, %s1099_s21  ;;  %p1105_p4 = scmp.lt.s32.totalorder %s1099_s21, %s1099_s21 }
  0x2c   :  { %926 = vmatprep.subr.bf16.mxu1 %v925_v9  ;;  %904 = vmatprep.subr.bf16.mxu0 %v1133_v0  ;;  %v254_v20 = vld [vmem:[%s1398_s3 + $0x28] sm:$0xff]  ;;  %v172_v21 = vld [vmem:[#allocation5 + $0xa0] sm:$0xff]  ;;  %v931_v22 = vpack.c.bf16 %v155_v17, %v154_v16  ;;  %v174_v28 = vld [vmem:[#allocation5 + $0xb0] sm:$0xff] }
  0x2d   :  { %928 = vmatpush3.bf16.msra.mxu1 %v927_v10  ;;  %v173_v23 = vld [vmem:[#allocation5 + $0xa8] sm:$0xff]  ;;  %v156_v25 = vld [vmem:[#allocation5 + $0x20] sm:$0xff]  ;;  %v908_v27 = vpack.c.bf16 %v254_v20, %v253_v19  ;;  %v175_v29 = vld [vmem:[#allocation5 + $0xb8] sm:$0xff]  ;;  %p1106_p5 = por %p1105_p4, %p1104_p3 }
  0x2e   :  { %930 = vmatprep.subr.bf16.mxu1 %v929_v18  ;;  %v933_v24 = vpack.c.bf16 %v173_v23, %v172_v21  ;;  %v157_v26 = vld [vmem:[#allocation5 + $0x28] sm:$0xff]  ;;  %v255_v30 = vld [vmem:[%s1398_s3 + $0x30] sm:$0xff]  ;;  %v256_v31 = vld [vmem:[%s1398_s3 + $0x38] sm:$0xff]  ;;  %v937_v33 = vpack.c.bf16 %v175_v29, %v174_v28 }
  0x2f   :  { %906 = vmatpush3.bf16.msra.mxu0 %v905_v14  ;;  %v935_v32 = vpack.c.bf16 %v157_v26, %v156_v25  ;;  %v158_v34 = vld [vmem:[#allocation5 + $0x30] sm:$0xff]  ;;  %v159_v35 = vld [vmem:[#allocation5 + $0x38] sm:$0xff]  ;;  %v911_v36 = vpack.c.bf16 %v256_v31, %v255_v30  ;;  %v176_v37 = vld [vmem:[#allocation5 + $0xc0] sm:$0xff]  ;;  %p1107_p6 = pnand %p1106_p5, %p1100_p2 }
  0x30   :  { %907 = vmatprep.subr.bf16.mxu0 %v1133_v0  ;;  %v177_v38 = vld [vmem:[#allocation5 + $0xc8] sm:$0xff]  ;;  %v257_v39 = vld [vmem:[%s1398_s3 + $0x40] sm:$0xff]  ;;  %v939_v41 = vpack.c.bf16 %v159_v35, %v158_v34  ;;  %v259_v46 = vld [vmem:[%s1398_s3 + $0x50] sm:$0xff] }
  0x31   :  { %932 = vmatpush3.bf16.msra.mxu1 %v931_v22  ;;  %v258_v40 = vld [vmem:[%s1398_s3 + $0x48] sm:$0xff]  ;;  %v941_v42 = vpack.c.bf16 %v177_v38, %v176_v37  ;;  %v160_v43 = vld [vmem:[#allocation5 + $0x40] sm:$0xff]  ;;  %v178_v47 = vld [vmem:[#allocation5 + $0xd0] sm:$0xff] }
  0x32   :  { %934 = vmatprep.subr.bf16.mxu1 %v933_v24  ;;  %v161_v44 = vld [vmem:[#allocation5 + $0x48] sm:$0xff]  ;;  %v914_v45 = vpack.c.bf16 %v258_v40, %v257_v39  ;;  %v179_v48 = vld [vmem:[#allocation5 + $0xd8] sm:$0xff]  ;;  %v55_v55 = vld [vmem:[#allocation2] sm:$0xff] }
  0x33   :  { %909 = vmatpush3.bf16.msra.mxu0 %v908_v27  ;;  %v260_v49 = vld [vmem:[%s1398_s3 + $0x58] sm:$0xff]  ;;  %v56_v50 = vld [vmem:[#allocation2 + $0x8] sm:$0xff]  ;;  %v943_v52 = vpack.c.bf16 %v161_v44, %v160_v43  ;;  %v945_v56 = vpack.c.bf16 %v179_v48, %v178_v47  ;;  %v162_v57 = vld [vmem:[#allocation5 + $0x50] sm:$0xff]  ;;  %v67_v60 = vrot.slane %v55_v55, 4 }
  0x34   :  { %910 = vmatprep.subr.bf16.mxu0 %v1133_v0  ;;  %v62_v51 = vld [vmem:[#allocation2 + $0x38] sm:$0xff]  ;;  %v73_v53 = vrot.slane %v56_v50, 4  ;;  %v61_v59 = vld [vmem:[#allocation2 + $0x30] sm:$0xff]  ;;  %v917_v61 = vpack.c.bf16 %v260_v49, %v259_v46  ;;  %v180_v62 = vld [vmem:[#allocation5 + $0xe0] sm:$0xff] }
  0x35   :  { %936 = vmatpush3.bf16.msra.mxu1 %v935_v32  ;;  %v109_v54 = vrot.slane %v62_v51, 4  ;;  %v163_v58 = vld [vmem:[#allocation5 + $0x58] sm:$0xff]  ;;  %v181_v63 = vld [vmem:[#allocation5 + $0xe8] sm:$0xff]  ;;  %v103_v4 = vrot.slane %v61_v59, 4  ;;  %v261_v5 = vld [vmem:[%s1398_s3 + $0x60] sm:$0xff]  ;;  %v68_v7 = vadd.f32 %v67_v60, %v55_v55 }
  0x36   :  { %938 = vmatprep.subr.bf16.mxu1 %v937_v33  ;;  %v74_v2 = vadd.f32 %v73_v53, %v56_v50  ;;  %v262_v6 = vld [vmem:[%s1398_s3 + $0x68] sm:$0xff]  ;;  %v947_v8 = vpack.c.bf16 %v163_v58, %v162_v57  ;;  %v949_v12 = vpack.c.bf16 %v181_v63, %v180_v62  ;;  %v164_v13 = vld [vmem:[#allocation5 + $0x60] sm:$0xff]  ;;  %v182_v17 = vld [vmem:[#allocation5 + $0xf0] sm:$0xff] }
  0x37   :  { %912 = vmatpush3.bf16.msra.mxu0 %v911_v36  ;;  %v110_v3 = vadd.f32 %v109_v54, %v62_v51  ;;  %v104_v11 = vadd.f32 %v103_v4, %v61_v59  ;;  %v165_v14 = vld [vmem:[#allocation5 + $0x68] sm:$0xff]  ;;  %v69_v15 = vrot.slane %v68_v7, 2  ;;  %v920_v16 = vpack.c.bf16 %v262_v6, %v261_v5  ;;  %v183_v18 = vld [vmem:[#allocation5 + $0xf8] sm:$0xff]  ;;  %v263_v22 = vld [vmem:[%s1398_s3 + $0x70] sm:$0xff] }
  0x38   :  { %913 = vmatprep.subr.bf16.mxu0 %v1133_v0  ;;  %v75_v9 = vrot.slane %v74_v2, 2  ;;  %v264_v23 = vld [vmem:[%s1398_s3 + $0x78] sm:$0xff]  ;;  %v951_v25 = vpack.c.bf16 %v165_v14, %v164_v13  ;;  %v200_v28 = vld [vmem:[#allocation5 + $0x180] sm:$0xff]  ;;  %v201_v29 = vld [vmem:[#allocation5 + $0x188] sm:$0xff]  ;;  %v953_v31 = vpack.c.bf16 %v183_v18, %v182_v17 }
  0x39   :  { %940 = vmatpush3.bf16.msra.mxu1 %v939_v41  ;;  %v111_v10 = vrot.slane %v110_v3, 2  ;;  %v105_v21 = vrot.slane %v104_v11, 2  ;;  %v70_v24 = vadd.f32 %v69_v15, %v68_v7  ;;  %v166_v32 = vld [vmem:[#allocation5 + $0x70] sm:$0xff]  ;;  %v167_v33 = vld [vmem:[#allocation5 + $0x78] sm:$0xff]  ;;  %v923_v35 = vpack.c.bf16 %v264_v23, %v263_v22  ;;  %v232_v39 = vld [vmem:[#allocation5 + $0x280] sm:$0xff] }
  0x3a   :  { %942 = vmatprep.subr.bf16.mxu1 %v941_v42  ;;  %v76_v19 = vadd.f32 %v75_v9, %v74_v2  ;;  %v233_v40 = vld [vmem:[#allocation5 + $0x288] sm:$0xff]  ;;  %v957_v41 = vpack.c.bf16 %v201_v29, %v200_v28  ;;  %v184_v43 = vld [vmem:[#allocation5 + $0x100] sm:$0xff]  ;;  %v202_v50 = vld [vmem:[#allocation5 + $0x190] sm:$0xff] }
  0x3b   :  { %915 = vmatpush3.bf16.msra.mxu0 %v914_v45  ;;  %v112_v20 = vadd.f32 %v111_v10, %v110_v3  ;;  %v106_v30 = vadd.f32 %v105_v21, %v104_v11  ;;  %v71_v34 = vrot.slane %v70_v24, 1  ;;  %v185_v44 = vld [vmem:[#allocation5 + $0x108] sm:$0xff]  ;;  %v955_v45 = vpack.c.bf16 %v167_v33, %v166_v32  ;;  %v248_v46 = vld [vmem:[%s1396_s1] sm:$0x3]  ;;  %v203_v51 = vld [vmem:[#allocation5 + $0x198] sm:$0xff] }
  0x3c   :  { %916 = vmatprep.subr.bf16.mxu0 %v1133_v0  ;;  %v77_v26 = vrot.slane %v76_v19, 1  ;;  %v989_v53 = vpack.c.bf16 %v233_v40, %v232_v39  ;;  %v216_v54 = vld [vmem:[#allocation5 + $0x200] sm:$0xff]  ;;  %v217_v55 = vld [vmem:[#allocation5 + $0x208] sm:$0xff]  ;;  %v959_v59 = vpack.c.bf16 %v185_v44, %v184_v43  ;;  %v187_v60 = vld [vmem:[#allocation5 + $0x118] sm:$0xff]  ;;  %v961_v63 = vpack.c.bf16 %v203_v51, %v202_v50 }
  0x3d   :  { %944 = vmatpush3.bf16.msra.mxu1 %v943_v52  ;;  %v113_v27 = vrot.slane %v112_v20, 1  ;;  %v107_v38 = vrot.slane %v106_v30, 1  ;;  %v72_v42 = vadd.f32 %v71_v34, %v70_v24  ;;  %v235_v62 = vld [vmem:[#allocation5 + $0x298] sm:$0xff]  ;;  %v218_v2 = vld [vmem:[#allocation5 + $0x210] sm:$0xff]  ;;  %v204_v4 = vld [vmem:[#allocation5 + $0x1a0] sm:$0xff]  ;;  %v991_v7 = vpack.c.bf16 %v217_v55, %v216_v54 }
  0x3e   :  { %946 = vmatprep.subr.bf16.mxu1 %v945_v56  ;;  %v78_v36 = vadd.f32 %v77_v26, %v76_v19  ;;  %v186_v56 = vld [vmem:[#allocation5 + $0x110] sm:$0xff]  ;;  %v219_v3 = vld [vmem:[#allocation5 + $0x218] sm:$0xff]  ;;  %v205_v5 = vld [vmem:[#allocation5 + $0x1a8] sm:$0xff] }
  0x3f   :  { %918 = vmatpush3.bf16.msra.mxu0 %v917_v61  ;;  %v114_v37 = vadd.f32 %v113_v27, %v112_v20  ;;  %v108_v49 = vadd.f32 %v107_v38, %v106_v30  ;;  %v140_v52 = vmul.f32 0.125, %v72_v42  ;;  %v234_v61 = vld [vmem:[#allocation5 + $0x290] sm:$0xff]  ;;  %v189_v9 = vld [vmem:[#allocation5 + $0x128] sm:$0xff]  ;;  %v236_v10 = vld [vmem:[#allocation5 + $0x2a0] sm:$0xff]  ;;  %v963_v19 = vpack.c.bf16 %v187_v60, %v186_v56 }
  0x40   :  { %919 = vmatprep.subr.bf16.mxu0 %v1133_v0  ;;  %v141_v47 = vmul.f32 0.125, %v78_v36  ;;  %v237_v11 = vld [vmem:[#allocation5 + $0x2a8] sm:$0xff]  ;;  %v206_v14 = vld [vmem:[#allocation5 + $0x1b0] sm:$0xff]  ;;  %v993_v15 = vpack.c.bf16 %v235_v62, %v234_v61  ;;  %v1272_v18 = vld [vmem:[#allocation5 + $0x138] sm:$0xff]  ;;  %v965_v23 = vpack.c.bf16 %v205_v5, %v204_v4  ;;  %v995_v27 = vpack.c.bf16 %v219_v3, %v218_v2 }
  0x41   :  { %948 = vmatpush3.bf16.msra.mxu1 %v947_v8  ;;  %v147_v48 = vmul.f32 0.125, %v114_v37  ;;  %v146_v58 = vmul.f32 0.125, %v108_v49  ;;  %v1264_v8 = vld [vmem:[#allocation5 + $0x120] sm:$0xff]  ;;  %v1268_v13 = vld [vmem:[#allocation5 + $0x228] sm:$0xff]  ;;  %v1270_v17 = vld [vmem:[#allocation5 + $0x130] sm:$0xff] }
  0x42   :  { %950 = vmatprep.subr.bf16.mxu1 %v949_v12  ;;  %v1266_v12 = vld [vmem:[#allocation5 + $0x220] sm:$0xff]  ;;  %v1274_v20 = vld [vmem:[#allocation5 + $0x2b0] sm:$0xff]  ;;  %v1276_v21 = vld [vmem:[#allocation5 + $0x2b8] sm:$0xff]  ;;  %v967_v30 = vpack.c.bf16 %v189_v9, %v1264_v8  ;;  %v971_v36 = vpack.c.bf16 %v1272_v18, %v1270_v17 }
  0x43   :  { %921 = vmatpush3.bf16.msra.mxu0 %v920_v16  ;;  %v349_v57 = vsel %vm347_vm1, %v147_v48, %v141_v47  ;;  %v348_v6 = vsel %vm347_vm1, %v146_v58, %v140_v52  ;;  %v207_v16 = vld [vmem:[#allocation5 + $0x1b8] sm:$0xff]  ;;  %v1278_v22 = vld [vmem:[#allocation5 + $0x230] sm:$0xff]  ;;  %v1284_v26 = vld [vmem:[#allocation5 + $0x1c8] sm:$0xff]  ;;  %v999_v32 = vpack.c.bf16 %v1268_v13, %v1266_v12  ;;  %v1001_v37 = vpack.c.bf16 %v1276_v21, %v1274_v20 }
  0x44   :  { %922 = vmatprep.subr.bf16.mxu0 %v1133_v0  ;;  %424 = vmatprep.mubr.f32.mxu1 %v349_v57  ;;  %v1280_v24 = vld [vmem:[#allocation5 + $0x238] sm:$0xff]  ;;  %v1286_v28 = vld [vmem:[#allocation5 + $0x140] sm:$0xff]  ;;  %v1288_v29 = vld [vmem:[#allocation5 + $0x148] sm:$0xff]  ;;  %v969_v33 = vpack.c.bf16 %v207_v16, %v206_v14 }
  0x45   :  { %952 = vmatpush3.bf16.msra.mxu1 %v951_v25  ;;  %v1282_v25 = vld [vmem:[#allocation5 + $0x1c0] sm:$0xff]  ;;  %v1003_v38 = vpack.c.bf16 %v1280_v24, %v1278_v22  ;;  %v58_v40 = vld [vmem:[#allocation2 + $0x18] sm:$0xff]  ;;  %v57_v42 = vld [vmem:[#allocation2 + $0x10] sm:$0xff]  ;;  %v975_v43 = vpack.c.bf16 %v1288_v29, %v1286_v28 }
  0x46   :  { %954 = vmatprep.subr.bf16.mxu1 %v953_v31  ;;  %v997_v31 = vpack.c.bf16 %v237_v11, %v236_v10  ;;  %v1293_v34 = vld [vmem:[#allocation5 + $0x2c0] sm:$0xff]  ;;  %v973_v39 = vpack.c.bf16 %v1284_v26, %v1282_v25  ;;  %v85_v44 = vrot.slane %v58_v40, 4  ;;  %v79_v47 = vrot.slane %v57_v42, 4  ;;  %v60_v48 = vld [vmem:[#allocation2 + $0x28] sm:$0xff]  ;;  %v66_v49 = vld [vmem:[#allocation2 + $0x58] sm:$0xff] }
  0x47   :  { %924 = vmatpush3.bf16.msra.mxu0 %v923_v35  ;;  %v1295_v35 = vld [vmem:[#allocation5 + $0x2c8] sm:$0xff]  ;;  %v97_v52 = vrot.slane %v60_v48, 4  ;;  %v59_v54 = vld [vmem:[#allocation2 + $0x20] sm:$0xff]  ;;  %v65_v55 = vld [vmem:[#allocation2 + $0x50] sm:$0xff] }
  0x48   :  { %958 = vmatprep.subr.bf16.mxu0 %v957_v41  ;;  %v64_v41 = vld [vmem:[#allocation2 + $0x48] sm:$0xff]  ;;  %v1005_v50 = vpack.c.bf16 %v1295_v35, %v1293_v34  ;;  %v86_v56 = vadd.f32 %v85_v44, %v58_v40  ;;  %v80_v58 = vadd.f32 %v79_v47, %v57_v42  ;;  %v224_v2 = vld [vmem:[#allocation5 + $0x240] sm:$0xff]  ;;  %v210_v8 = vld [vmem:[#allocation5 + $0x1d0] sm:$0xff] }
  0x49   :  { %956 = vmatpush3.bf16.msra.mxu1 %v955_v45  ;;  %v121_v45 = vrot.slane %v64_v41, 4  ;;  %v98_v61 = vadd.f32 %v97_v52, %v60_v48  ;;  %v211_v9 = vld [vmem:[#allocation5 + $0x1d8] sm:$0xff]  ;;  %v194_v14 = vld [vmem:[#allocation5 + $0x150] sm:$0xff]  ;;  %v244_v22 = vld [vmem:[#allocation5 + $0x2e0] sm:$0xff] }
  0x4a   :  { %864 = vmatmul.mubr.f32.vlgmr.msra.gmra.mrb[0].mxu0 %v248_v46  ;;  %990 = vmatprep.subr.bf16.mxu1 %v989_v53  ;;  %v63_v46 = vld [vmem:[#allocation2 + $0x40] sm:$0xff]  ;;  %v133_v53 = vrot.slane %v66_v49, 4  ;;  %v87_v3 = vrot.slane %v86_v56, 2  ;;  %v81_v5 = vrot.slane %v80_v58, 2  ;;  %v242_v20 = vld [vmem:[#allocation5 + $0x2d0] sm:$0xff]  ;;  %v243_v21 = vld [vmem:[#allocation5 + $0x2d8] sm:$0xff] }
  0x4b   :  { %960 = vmatpush3.bf16.msra.mxu0 %v959_v59  ;;  %v115_v51 = vrot.slane %v63_v46, 4  ;;  %v122_v57 = vadd.f32 %v121_v45, %v64_v41  ;;  %v91_v59 = vrot.slane %v59_v54, 4  ;;  %v99_v11 = vrot.slane %v98_v61, 2  ;;  %v227_v35 = vld [vmem:[#allocation5 + $0x258] sm:$0xff]  ;;  %v245_v24 = vld [vmem:[#allocation5 + $0x2e8] sm:$0xff] }
  0x4c   :  { %425 = vmatmul.mubr.f32.vlgmr.msra.gmra.mrb[0].mxu1 %v348_v6  ;;  %962 = vmatprep.subr.bf16.mxu0 %v961_v63  ;;  %v134_v62 = vadd.f32 %v133_v53, %v66_v49  ;;  %v127_v63 = vrot.slane %v65_v55, 4  ;;  %v82_v17 = vadd.f32 %v81_v5, %v80_v58  ;;  %v197_v49 = vld [vmem:[#allocation5 + $0x168] sm:$0xff]  ;;  %v215_v58 = vld [vmem:[#allocation5 + $0x1f8] sm:$0xff] }
  0x4d   :  { %992 = vmatpush3.bf16.msra.mxu1 %v991_v7  ;;  %v116_v60 = vadd.f32 %v115_v51, %v63_v46  ;;  %v123_v4 = vrot.slane %v122_v57, 2  ;;  %v92_v6 = vadd.f32 %v91_v59, %v59_v54  ;;  %v225_v7 = vld [vmem:[#allocation5 + $0x248] sm:$0xff]  ;;  %v100_v25 = vadd.f32 %v99_v11, %v98_v61 }
  0x4e   :  { %994 = vmatprep.subr.bf16.mxu1 %v993_v15  ;;  %v135_v12 = vrot.slane %v134_v62, 2  ;;  %v128_v13 = vadd.f32 %v127_v63, %v65_v55  ;;  %v88_v15 = vadd.f32 %v87_v3, %v86_v56  ;;  %v1009_v46 = vpack.c.bf16 %v243_v21, %v242_v20  ;;  %v229_v63 = vld [vmem:[#allocation5 + $0x268] sm:$0xff]  ;;  %v246_v3 = vld [vmem:[#allocation5 + $0x2f0] sm:$0xff] }
  0x4f   :  { %964 = vmatpush3.bf16.msra.mxu0 %v963_v19  ;;  %v117_v10 = vrot.slane %v116_v60, 2  ;;  %v124_v16 = vadd.f32 %v123_v4, %v122_v57  ;;  %v93_v18 = vrot.slane %v92_v6, 2  ;;  %v195_v19 = vld [vmem:[#allocation5 + $0x158] sm:$0xff]  ;;  %v101_v40 = vrot.slane %v100_v25, 1  ;;  %v214_v57 = vld [vmem:[#allocation5 + $0x1f0] sm:$0xff] }
  0x50   :  { %966 = vmatprep.subr.bf16.mxu0 %v965_v23  ;;  %v136_v26 = vadd.f32 %v135_v12, %v134_v62  ;;  %v979_v45 = vpack.c.bf16 %v195_v19, %v194_v14  ;;  %v228_v62 = vld [vmem:[#allocation5 + $0x260] sm:$0xff]  ;;  %v247_v4 = vld [vmem:[#allocation5 + $0x2f8] sm:$0xff] }
  0x51   :  { %996 = vmatpush3.bf16.msra.mxu1 %v995_v27  ;;  %v118_v23 = vadd.f32 %v117_v10, %v116_v60  ;;  %v129_v27 = vrot.slane %v128_v13, 2  ;;  %v125_v34 = vrot.slane %v124_v16, 1  ;;  %v94_v42 = vadd.f32 %v93_v18, %v92_v6  ;;  %v199_v10 = vld [vmem:[#allocation5 + $0x178] sm:$0xff] }
  0x52   :  { %998 = vmatprep.subr.bf16.mxu1 %v997_v31  ;;  %v977_v31 = vpack.c.bf16 %v211_v9, %v210_v8  ;;  %v137_v41 = vrot.slane %v136_v26, 1  ;;  %v102_v52 = vadd.f32 %v101_v40, %v100_v25  ;;  %v985_v8 = vpack.c.bf16 %v215_v58, %v214_v57  ;;  %v198_v9 = vld [vmem:[#allocation5 + $0x170] sm:$0xff]  ;;  %v586_v40 = vld [vmem:[%s1400_s5 + $0x38] sm:$0xff] }
  0x53   :  { %968 = vmatpush3.bf16.msra.mxu0 %v967_v30  ;;  %v1007_v30 = vpack.c.bf16 %v225_v7, %v224_v2  ;;  %v130_v44 = vadd.f32 %v129_v27, %v128_v13  ;;  %v126_v48 = vadd.f32 %v125_v34, %v124_v16  ;;  %v119_v51 = vrot.slane %v118_v23, 1  ;;  %v231_v16 = vld [vmem:[#allocation5 + $0x278] sm:$0xff]  ;;  %v579_v27 = vld [vmem:[%s1400_s5] sm:$0xff] }
  0x54   :  { %970 = vmatprep.subr.bf16.mxu0 %v969_v33  ;;  %v89_v33 = vrot.slane %v88_v15, 1  ;;  %v138_v53 = vadd.f32 %v137_v41, %v136_v26  ;;  %v145_v59 = vmul.f32 0.125, %v102_v52  ;;  %v95_v61 = vrot.slane %v94_v42, 1  ;;  %v583_v34 = vld [vmem:[%s1400_s5 + $0x20] sm:$0xff] }
  0x55   :  { %1000 = vmatpush3.bf16.msra.mxu1 %v999_v32  ;;  %v226_v32 = vld [vmem:[#allocation5 + $0x250] sm:$0xff]  ;;  %v149_v56 = vmul.f32 0.125, %v126_v48  ;;  %v131_v28 = vrot.slane %v130_v44, 1  ;;  %v120_v6 = vadd.f32 %v119_v51, %v118_v23  ;;  %v1015_v11 = vpack.c.bf16 %v229_v63, %v228_v62  ;;  %v591_v48 = vld [vmem:[%s1400_s5 + $0x60] sm:$0xff] }
  0x56   :  { %1002 = vmatprep.subr.bf16.mxu1 %v1001_v37  ;;  %v212_v37 = vld [vmem:[#allocation5 + $0x1e0] sm:$0xff]  ;;  %v90_v47 = vadd.f32 %v89_v33, %v88_v15  ;;  %v1011_v54 = vpack.c.bf16 %v227_v35, %v226_v32  ;;  %v151_v60 = vmul.f32 0.125, %v138_v53  ;;  %v96_v12 = vadd.f32 %v95_v61, %v94_v42  ;;  %v230_v15 = vld [vmem:[#allocation5 + $0x270] sm:$0xff]  ;;  %v582_v33 = vld [vmem:[%s1400_s5 + $0x18] sm:$0xff] }
  0x57   :  { %972 = vmatpush3.bf16.msra.mxu0 %v971_v36  ;;  %v213_v36 = vld [vmem:[#allocation5 + $0x1e8] sm:$0xff]  ;;  %v132_v13 = vadd.f32 %v131_v28, %v130_v44  ;;  %v1017_v14 = vpack.c.bf16 %v247_v4, %v246_v3  ;;  %v987_v18 = vpack.c.bf16 %v199_v10, %v198_v9  ;;  %v1019_v20 = vpack.c.bf16 %v231_v16, %v230_v15  ;;  %v587_v42 = vld [vmem:[%s1400_s5 + $0x40] sm:$0xff] }
  0x58   :  { %974 = vmatprep.subr.bf16.mxu0 %v973_v39  ;;  %v196_v39 = vld [vmem:[#allocation5 + $0x160] sm:$0xff]  ;;  %v981_v55 = vpack.c.bf16 %v213_v36, %v212_v37  ;;  %v353_v7 = vsel %vm347_vm1, %v151_v60, %v145_v59  ;;  %v144_v21 = vmul.f32 0.125, %v96_v12  ;;  %v584_v35 = vld [vmem:[%s1400_s5 + $0x28] sm:$0xff]  ;;  %v585_v36 = vld [vmem:[%s1400_s5 + $0x30] sm:$0xff] }
  0x59   :  { %1004 = vmatpush3.bf16.msra.mxu1 %v1003_v38  ;;  %v83_v38 = vrot.slane %v82_v17, 1  ;;  %v983_v29 = vpack.c.bf16 %v197_v49, %v196_v39  ;;  %564 = vmatprep.mubr.f32.mxu1 %v353_v7  ;;  %v150_v23 = vmul.f32 0.125, %v132_v13  ;;  %v1028_v37 = vpack.c.bf16 %v584_v35, %v583_v34  ;;  %v588_v44 = vld [vmem:[%s1400_s5 + $0x48] sm:$0xff]  ;;  %v590_v39 = vld [vmem:[%s1400_s5 + $0x58] sm:$0xff] }
  0x5a   :  { %1006 = vmatprep.subr.bf16.mxu1 %v1005_v50  ;;  %v143_v50 = vmul.f32 0.125, %v90_v47  ;;  %v1031_v41 = vpack.c.bf16 %v586_v40, %v585_v36  ;;  %v592_v49 = vld [vmem:[%s1400_s5 + $0x68] sm:$0xff] }
  0x5b   :  { %976 = vmatpush3.bf16.msra.mxu0 %v975_v43  ;;  %v1013_v43 = vpack.c.bf16 %v245_v24, %v244_v22  ;;  %v84_v5 = vadd.f32 %v83_v38, %v82_v17  ;;  %v148_v17 = vmul.f32 0.125, %v120_v6  ;;  %v352_v26 = vsel %vm347_vm1, %v150_v23, %v144_v21  ;;  %v593_v24 = vld [vmem:[%s1400_s5 + $0x70] sm:$0xff]  ;;  %v594_v38 = vld [vmem:[%s1400_s5 + $0x78] sm:$0xff] }
  0x5c   :  { %978 = vmatprep.subr.bf16.mxu0 %v977_v31  ;;  %v351_v2 = vsel %vm347_vm1, %v149_v56, %v143_v50  ;;  %v581_v31 = vld [vmem:[%s1400_s5 + $0x10] sm:$0xff]  ;;  %v1040_v22 = vpack.c.bf16 %v592_v49, %v591_v48  ;;  %v1043_v51 = vpack.c.bf16 %v594_v38, %v593_v24 }
  0x5d   :  { %1008 = vmatpush3.bf16.msra.mxu1 %v1007_v30  ;;  %494 = vmatprep.mubr.f32.mxu0 %v351_v2  ;;  %v142_v19 = vmul.f32 0.125, %v84_v5  ;;  %v580_v30 = vld [vmem:[%s1400_s5 + $0x8] sm:$0xff]  ;;  %v691_v2 = vld [vmem:[%s1401_s6] ss:$0 sm:$0xff] }
  0x5e   :  { %1010 = vmatprep.subr.bf16.mxu1 %v1009_v46  ;;  %v1022_v32 = vpack.c.bf16 %v580_v30, %v579_v27  ;;  %v589_v46 = vld [vmem:[%s1400_s5 + $0x50] sm:$0xff] }
  0x5f   :  { %980 = vmatpush3.bf16.msra.mxu0 %v979_v45  ;;  %v350_v25 = vsel %vm347_vm1, %v148_v17, %v142_v19  ;;  %v1034_v45 = vpack.c.bf16 %v588_v44, %v587_v42  ;;  %v1037_v47 = vpack.c.bf16 %v590_v39, %v589_v46 }
  0x60   :  { %982 = vmatprep.subr.bf16.mxu0 %v981_v55 }
  0x61   :  { %1012 = vmatpush3.bf16.msra.mxu1 %v1011_v54 }
  0x62   :  { %1014 = vmatprep.subr.bf16.mxu1 %v1013_v43 }
  0x63   :  { %984 = vmatpush3.bf16.msra.mxu0 %v983_v29  ;;  %v690_v29 = vld [vmem:[%s1399_s4] ss:$0 sm:$0xff] }
  0x64   :  { %986 = vmatprep.subr.bf16.mxu0 %v985_v8 }
  0x65   :  { %1016 = vmatpush3.bf16.msra.mxu1 %v1015_v11 }
  0x66   :  { %1018 = vmatprep.subr.bf16.mxu1 %v1017_v14 }
  0x67   :  { %988 = vmatpush3.bf16.msra.mxu0 %v987_v18 }
  0x68   :  { %1021 = vmatprep.subr.bf16.mxu0 %v1133_v0 }
  0x69   :  { %1020 = vmatpush3.bf16.msra.mxu1 %v1019_v20 }
  0x6a   :  { %495 = vmatmul.mubr.f32.vlgmr.msra.gmra.mrb[2].mxu0 %v350_v25 }
  0x6b   :  { %898 = vmatprep.mubr.msk.f32.mxu0 %vm1134_vm0, %v1135_v1  ;;  %1023 = vmatpush3.bf16.msra.mxu0 %v1022_v32  ;;  %v1025_v1 = vpack.c.bf16 %v582_v33, %v581_v31 }
  0x6c   :  { %565 = vmatmul.mubr.f32.vlgmr.msra.gmra.mrb[2].mxu1 %v352_v26  ;;  %1024 = vmatprep.subr.bf16.mxu0 %v1133_v0 }
  0x6f   :  { %1026 = vmatpush3.bf16.msra.mxu0 %v1025_v1 }
  0x70   :  { %1027 = vmatprep.subr.bf16.mxu0 %v1133_v0 }
  0x73   :  { %1029 = vmatpush3.bf16.msra.mxu0 %v1028_v37 }
  0x74   :  { %1030 = vmatprep.subr.bf16.mxu0 %v1133_v0 }
  0x77   :  { %1032 = vmatpush3.bf16.msra.mxu0 %v1031_v41 }
  0x78   :  { %1033 = vmatprep.subr.bf16.mxu0 %v1133_v0 }
  0x7b   :  { %1035 = vmatpush3.bf16.msra.mxu0 %v1034_v45 }
  0x7c   :  { %1036 = vmatprep.subr.bf16.mxu0 %v1133_v0 }
  0x7f   :  { %1038 = vmatpush3.bf16.msra.mxu0 %v1037_v47 }
  0x80   :  { %1039 = vmatprep.subr.bf16.mxu0 %v1133_v0 }
  0x83   :  { %1041 = vmatpush3.bf16.msra.mxu0 %v1040_v22 }
  0x84   :  { %1042 = vmatprep.subr.bf16.mxu0 %v1133_v0 }
  0x87   :  { %1044 = vmatpush3.bf16.msra.mxu0 %v1043_v51 }
 0x11d   :  { %v331_v52 = vpop.f32.mrb[0].mxu0 }
 0x11e   :  { %v865_v53 = vpop.f32.mrb[1].mxu0 }
 0x11f   :  { %v741_v54 = vpop.f32.mrb[0].mxu1 }
 0x120   :  { %v742_v55 = vpop.f32.mrb[1].mxu1 }
 0x121   :  { %v743_v50 = vadd.f32 %v742_v55, %v741_v54 }
 0x123   :  { %v427_v56 = vadd.f32 %v743_v50, %v331_v52 }
 0x13d   :  { %v776_v57 = vpop.f32.mrb[2].mxu0 }
 0x13e   :  { %v777_v58 = vpop.f32.mrb[3].mxu0 }
 0x13f   :  { %v778_v59 = vadd.f32 %v777_v58, %v776_v57  ;;  %v811_v0 = vpop.f32.mrb[2].mxu1 }
 0x140   :  { %v812_v60 = vpop.f32.mrb[3].mxu1 }
 0x141   :  { %v497_v61 = vadd.f32 %v778_v59, %v427_v56  ;;  %v813_v28 = vadd.f32 %v812_v60, %v811_v0 }
 0x143   :  { %v567_v43 = vadd.f32 %v813_v28, %v497_v61 }
 0x145   :  { %v577_v62 = vadd.f32 %v690_v29, %v567_v43 }
 0x147   :  { %v578_v63 = vmax.f32 %v577_v62, 0.0 }
 0x149   :  { %899 = vmatmul.mubr.f32.vlgmr.msra.gmra.mrb[4].mxu0 %v578_v63 }
 0x21c   :  { %v668_v3 = vpop.f32.mrb[4].mxu0 }
 0x21d   :  { %v669_v4 = vadd.f32 %v691_v2, %v668_v3  ;;  %v900_v5 = vpop.f32.mrb[5].mxu0 }
 0x21f   :  { %673 = vst.msk [vmem:[#allocation7] sm:$0x3] %vm672_vm2, %v669_v4 }
 0x220   :  { %1110 = shalt.err (!%p1107_p6)
}
 0x221   :  { %s1111_s23 = scalar_lea.hbm %s1402_s7, 32 }
 0x222   :  { %p1112_p7 = scmp.ne.s32.totalorder %s1402_s7, %s1111_s23  ;;  %p1115_p8 = scmp.lt.u32.totalorder %s1111_s23, %s1402_s7 }
 0x224   :  { %p1117_p9 = pnand %p1115_p8, %p1112_p7 }
 0x226   :  { %1120 = shalt.err (!%p1117_p9)
}
 0x227   :  { %683 = dma.vmem_to_hbm [thread:$0]  %s681_s20, 32, %s1402_s7, [#allocation4]  }
 0x228   :  { %1125 = dma.done.wait [#allocation4], 32  }
 0x229   :  { %1126 = vsyncadd [#allocation4], 4294967264 }
 0x22a   :  { %687 = vsyncpa [#allocation3], 1 }
 0x22b   :  { %688 = vsyncpa [#allocation6], 1 }
 0x22c   :  { %689 = vsyncpa [#allocation4], 1 }

</bundles_post_ra>
